<compile_context>
chip_gen: v5e
topology: v5e:2x2
jax: 0.10.0
libtpu: 0.0.40
codegen_flags: <defaults>
</compile_context>

<pallas_src>
import numpy as np
import jax
import jax.numpy as jnp
from jax.experimental import pallas as pl
from jax.experimental.pallas import tpu as pltpu

BN_EPS = 1e-5
LANE = 128        # TPU lane width
HEAD_PAD = 128    # pad the (B, 1) head output to a full lane-dense 128-wide tile


def _round_up(n, m):
    return ((n + m - 1) // m) * m


# ------------------------------- Pallas kernel ------------------------------ #

def _fused_resnet_kernel(x_ref, *refs):
    """Whole network in one kernel; activations stay resident in VMEM.

    refs layout: [wp0, gb0, wp1, gb1, wp2, gb2, wp3, gb3, wh_pad, bh_pad, o_ref]
      wp_i   : (fin_i, 2*fpad_i) bf16 = [W_i^T | P_i], each half lane-padded
      gb_i   : (2, fpad_i) f32        = rows [gamma; beta]
      wh_pad : (128, HEAD_PAD) bf16, bh_pad : (1, HEAD_PAD) f32
    """
    o_ref = refs[-1]
    wh_ref, bh_ref = refs[-3], refs[-2]
    block_refs = refs[:-3]
    n_blocks = len(block_refs) // 2

    out = x_ref[...]
    for i in range(n_blocks):
        wp_ref, gb_ref = block_refs[2 * i], block_refs[2 * i + 1]
        fpad = gb_ref.shape[1]  # lane-padded block width (multiple of 128)

        # One wide MXU matmul for the Linear and the pooled skip (shared LHS).
        # Weights live in bf16 (half the HBM bytes); accumulate in f32.
        hw = jnp.dot(out, wp_ref[...].astype(jnp.float32),
                     preferred_element_type=jnp.float32)
        h, skip = hw[:, :fpad], hw[:, fpad:]      # both splits 128-lane aligned

        # BatchNorm1d (train mode, biased variance), one-pass stats, folded to
        # a single scale/shift.  Linear bias dropped: cancels in (h - mean).
        mean = jnp.mean(h, axis=0, keepdims=True)
        var = jnp.mean(h * h, axis=0, keepdims=True) - mean * mean
        scale = gb_ref[0:1, :] * jax.lax.rsqrt(var + BN_EPS)
        shift = gb_ref[1:2, :] - mean * scale

        out = skip + jnp.maximum(h * scale + shift, 0.0)

    # Head Linear(64, 1), zero-padded to 128 rows / 128 output lanes:
    # unmasked lane-dense store, wrapper slices column 0.
    o_ref[...] = (
        jnp.dot(out, wh_ref[...].astype(jnp.float32),
                preferred_element_type=jnp.float32)
        + bh_ref[...]
    )


# ------------------------------ Parameter glue ------------------------------ #

def adaptive_avg_pool1d_matrix(L, out_size):
    """Matrix P (L, out_size) such that x @ P == AdaptiveAvgPool1d(out_size)(x)."""
    P = np.zeros((L, out_size), dtype=np.float32)
    for i in range(out_size):
        start = (i * L) // out_size
        end = ((i + 1) * L + out_size - 1) // out_size  # ceil
        P[start:end, i] = 1.0 / (end - start)
    return jnp.asarray(P)


def init_torch_params(key, in_feats):
    """PyTorch-shaped parameters (weights pre-rounded to bf16 values).

    Blocks: in_feats->128, 128->256, 256->128, 128->64; head: 64->1.
    """
    dims = [in_feats, 128, 256, 128, 64]
    blocks = []
    for li in range(4):
        fin, fout = dims[li], dims[li + 1]
        key, k1 = jax.random.split(key)
        bound = 1.0 / np.sqrt(fin)
        w = jax.random.uniform(k1, (fout, fin), jnp.float32, -bound, bound)
        w = w.astype(jnp.bfloat16).astype(jnp.float32)   # stored precision
        gamma = jnp.ones((fout,), jnp.float32)           # BatchNorm1d defaults
        beta = jnp.zeros((fout,), jnp.float32)
        blocks.append((w, gamma, beta))
    key, k1, k2 = jax.random.split(key, 3)
    bound = 1.0 / np.sqrt(64)
    wh = jax.random.uniform(k1, (1, 64), jnp.float32, -bound, bound)
    wh = wh.astype(jnp.bfloat16).astype(jnp.float32)
    bh = jax.random.uniform(k2, (1,), jnp.float32, -bound, bound)
    return blocks, (wh, bh)


def pack_params(blocks, head):
    """Pack into the kernel's input layout (bf16 weights, packed gamma/beta)."""
    packed = []
    for (w, gamma, beta) in blocks:
        fout, fin = w.shape
        fpad = _round_up(fout, LANE)
        pool = adaptive_avg_pool1d_matrix(fin, fout)              # (fin, fout)
        wp = jnp.zeros((fin, 2 * fpad), jnp.float32)
        wp = wp.at[:, :fout].set(w.T)
        wp = wp.at[:, fpad:fpad + fout].set(pool)
        gb = jnp.zeros((2, fpad), jnp.float32)
        gb = gb.at[0, :fout].set(gamma)
        gb = gb.at[1, :fout].set(beta)
        packed.append((wp.astype(jnp.bfloat16), gb))
    wh, bh = head
    fin = wh.shape[1]                                             # 64
    fin_pad = _round_up(fin, LANE)                                # 128
    wh_pad = jnp.zeros((fin_pad, HEAD_PAD), jnp.float32).at[:fin, :1].set(wh.T)
    bh_pad = jnp.zeros((1, HEAD_PAD), jnp.float32).at[:, :1].set(bh.reshape(1, 1))
    return packed, (wh_pad.astype(jnp.bfloat16), bh_pad)


# --------------------------------- Wrapper ---------------------------------- #

def resnet_forward(x, packed, head_packed):
    B = x.shape[0]
    wh_pad, bh_pad = head_packed

    inputs = [x]
    flops = 0
    bytes_accessed = int(x.size) * 4
    transcendentals = 0
    for wp, gb in packed:
        inputs += [wp, gb]
        flops += 2 * B * wp.shape[0] * wp.shape[1]
        bytes_accessed += int(wp.size) * wp.dtype.itemsize + int(gb.size) * 4
        transcendentals += gb.shape[1]            # one rsqrt per output feature
    inputs += [wh_pad, bh_pad]
    flops += 2 * B * wh_pad.shape[0] * wh_pad.shape[1]
    bytes_accessed += (int(wh_pad.size) * wh_pad.dtype.itemsize
                       + int(bh_pad.size) * 4 + B * HEAD_PAD * 4)

    vmem = pl.BlockSpec(memory_space=pltpu.MemorySpace.VMEM)
    out_padded = pl.pallas_call(
        _fused_resnet_kernel,
        out_shape=jax.ShapeDtypeStruct((B, HEAD_PAD), jnp.float32),
        in_specs=[vmem] * len(inputs),
        out_specs=vmem,
        cost_estimate=pl.CostEstimate(
            flops=int(flops),
            transcendentals=int(transcendentals),
            bytes_accessed=int(bytes_accessed),
        ),
    )(*inputs)
    # TODO(synk): if the batch ever grows large, add a batch grid (Bt=128 on
    # v5e, 256 on v6e/v7x, "parallel" for v7x's two TensorCores, weights with
    # constant index_map so they stay VMEM-resident) and switch BN stats to a
    # two-pass cross-tile reduction.
    return out_padded[:, :1]


# Pure-JAX reference mirroring the PyTorch forward (with Linear bias folded
# out only in the kernel; reference uses the exact same bf16-rounded weights).
def resnet_reference(x, blocks, head):
    out = x
    for (w, gamma, beta) in blocks:
        fout, fin = w.shape
        pool = adaptive_avg_pool1d_matrix(fin, fout)
        h = out @ w.T                       # bias omitted: exact no-op under BN
        mean = h.mean(0, keepdims=True)
        var = ((h - mean) ** 2).mean(0, keepdims=True)
        hn = (h - mean) * jax.lax.rsqrt(var + BN_EPS) * gamma + beta
        out = out @ pool + jnp.maximum(hn, 0.0)
    wh, bh = head
    return out @ wh.T + bh


if __name__ == "__main__":
    key = jax.random.PRNGKey(0)
    key, kx, kp = jax.random.split(key, 3)

    B, IN_FEATS = 8, 16  # len(tr_feats) chosen as 16 for this synthetic run
    x = jax.random.normal(kx, (B, IN_FEATS), dtype=jnp.float32)

    blocks, head = init_torch_params(kp, IN_FEATS)
    packed, head_packed = pack_params(blocks, head)

    out = resnet_forward(x, packed, head_packed)
    out = jax.block_until_ready(out)

    ref = resnet_reference(x, blocks, head)
    assert out.shape == (B, 1)
    np.testing.assert_allclose(np.asarray(out), np.asarray(ref),
                               rtol=2e-4, atol=2e-4)
    print("KERNEL_OK")
</pallas_src>

<mosaic_0001>
module attributes {stable_mosaic.version = 11 : i64} {
  func.func @_fused_resnet_kernel(%arg0: memref<8x16xf32, #tpu.memory_space<vmem>>, %arg1: memref<16x256xbf16, #tpu.memory_space<vmem>>, %arg2: memref<2x128xf32, #tpu.memory_space<vmem>>, %arg3: memref<128x512xbf16, #tpu.memory_space<vmem>>, %arg4: memref<2x256xf32, #tpu.memory_space<vmem>>, %arg5: memref<256x256xbf16, #tpu.memory_space<vmem>>, %arg6: memref<2x128xf32, #tpu.memory_space<vmem>>, %arg7: memref<128x256xbf16, #tpu.memory_space<vmem>>, %arg8: memref<2x128xf32, #tpu.memory_space<vmem>>, %arg9: memref<128x128xbf16, #tpu.memory_space<vmem>>, %arg10: memref<1x128xf32, #tpu.memory_space<vmem>>, %arg11: memref<8x128xf32, #tpu.memory_space<vmem>>) attributes {dimension_semantics = [], scalar_prefetch = 0 : i64, scratch_operands = 0 : i64, tpu.core_type = #tpu.core_type<tc>} {
    %c0 = arith.constant 0 : index
    %c0_0 = arith.constant 0 : index
    %0 = vector.load %arg0[%c0, %c0_0] : memref<8x16xf32, #tpu.memory_space<vmem>>, vector<8x16xf32>
    %c0_1 = arith.constant 0 : index
    %c0_2 = arith.constant 0 : index
    %1 = vector.load %arg1[%c0_1, %c0_2] : memref<16x256xbf16, #tpu.memory_space<vmem>>, vector<16x256xbf16>
    %2 = arith.extf %1 : vector<16x256xbf16> to vector<16x256xf32>
    %cst = arith.constant dense<0.000000e+00> : vector<8x256xf32>
    %3 = tpu.matmul %0, %2, %cst {dimension_numbers = #tpu.dot_dimension_numbers<[1], [0], [0], [1], [0, 0, 1, 1], [], []>} : vector<8x16xf32>, vector<16x256xf32>, vector<8x256xf32> -> vector<8x256xf32>
    %4 = vector.extract_strided_slice %3 {offsets = [0, 0], sizes = [8, 128], strides = [1, 1]} : vector<8x256xf32> to vector<8x128xf32>
    %5 = vector.extract_strided_slice %3 {offsets = [0, 128], sizes = [8, 128], strides = [1, 1]} : vector<8x256xf32> to vector<8x128xf32>
    %cst_3 = arith.constant dense<0.000000e+00> : vector<128xf32>
    %6 = vector.multi_reduction <add>, %4, %cst_3 [0] : vector<8x128xf32> to vector<128xf32>
    %7 = vector.shape_cast %6 : vector<128xf32> to vector<1x128xf32>
    %cst_4 = arith.constant 8.000000e+00 : f32
    %8 = vector.broadcast %cst_4 : f32 to vector<1x128xf32>
    %9 = arith.divf %7, %8 : vector<1x128xf32>
    %10 = arith.mulf %4, %4 : vector<8x128xf32>
    %cst_5 = arith.constant dense<0.000000e+00> : vector<128xf32>
    %11 = vector.multi_reduction <add>, %10, %cst_5 [0] : vector<8x128xf32> to vector<128xf32>
    %12 = vector.shape_cast %11 : vector<128xf32> to vector<1x128xf32>
    %cst_6 = arith.constant 8.000000e+00 : f32
    %13 = vector.broadcast %cst_6 : f32 to vector<1x128xf32>
    %14 = arith.divf %12, %13 : vector<1x128xf32>
    %15 = arith.mulf %9, %9 : vector<1x128xf32>
    %16 = arith.subf %14, %15 : vector<1x128xf32>
    %c0_7 = arith.constant 0 : index
    %c0_8 = arith.constant 0 : index
    %17 = vector.load %arg2[%c0_7, %c0_8] : memref<2x128xf32, #tpu.memory_space<vmem>>, vector<1x128xf32>
    %cst_9 = arith.constant 9.99999974E-6 : f32
    %18 = vector.broadcast %cst_9 : f32 to vector<1x128xf32>
    %19 = arith.addf %16, %18 : vector<1x128xf32>
    %20 = math.rsqrt %19 : vector<1x128xf32>
    %21 = arith.mulf %17, %20 : vector<1x128xf32>
    %c1 = arith.constant 1 : index
    %c0_10 = arith.constant 0 : index
    %22 = vector.load %arg2[%c1, %c0_10] : memref<2x128xf32, #tpu.memory_space<vmem>>, vector<1x128xf32>
    %23 = arith.mulf %9, %21 : vector<1x128xf32>
    %24 = arith.subf %22, %23 : vector<1x128xf32>
    %25 = vector.broadcast %21 : vector<1x128xf32> to vector<8x128xf32>
    %26 = arith.mulf %4, %25 : vector<8x128xf32>
    %27 = vector.broadcast %24 : vector<1x128xf32> to vector<8x128xf32>
    %28 = arith.addf %26, %27 : vector<8x128xf32>
    %cst_11 = arith.constant 0.000000e+00 : f32
    %29 = vector.broadcast %cst_11 : f32 to vector<8x128xf32>
    %30 = arith.maximumf %28, %29 : vector<8x128xf32>
    %31 = arith.addf %5, %30 : vector<8x128xf32>
    %c0_12 = arith.constant 0 : index
    %c0_13 = arith.constant 0 : index
    %32 = vector.load %arg3[%c0_12, %c0_13] : memref<128x512xbf16, #tpu.memory_space<vmem>>, vector<128x512xbf16>
    %33 = arith.extf %32 : vector<128x512xbf16> to vector<128x512xf32>
    %cst_14 = arith.constant dense<0.000000e+00> : vector<8x512xf32>
    %34 = tpu.matmul %31, %33, %cst_14 {dimension_numbers = #tpu.dot_dimension_numbers<[1], [0], [0], [1], [0, 0, 1, 1], [], []>} : vector<8x128xf32>, vector<128x512xf32>, vector<8x512xf32> -> vector<8x512xf32>
    %35 = vector.extract_strided_slice %34 {offsets = [0, 0], sizes = [8, 256], strides = [1, 1]} : vector<8x512xf32> to vector<8x256xf32>
    %36 = vector.extract_strided_slice %34 {offsets = [0, 256], sizes = [8, 256], strides = [1, 1]} : vector<8x512xf32> to vector<8x256xf32>
    %cst_15 = arith.constant dense<0.000000e+00> : vector<256xf32>
    %37 = vector.multi_reduction <add>, %35, %cst_15 [0] : vector<8x256xf32> to vector<256xf32>
    %38 = vector.shape_cast %37 : vector<256xf32> to vector<1x256xf32>
    %cst_16 = arith.constant 8.000000e+00 : f32
    %39 = vector.broadcast %cst_16 : f32 to vector<1x256xf32>
    %40 = arith.divf %38, %39 : vector<1x256xf32>
    %41 = arith.mulf %35, %35 : vector<8x256xf32>
    %cst_17 = arith.constant dense<0.000000e+00> : vector<256xf32>
    %42 = vector.multi_reduction <add>, %41, %cst_17 [0] : vector<8x256xf32> to vector<256xf32>
    %43 = vector.shape_cast %42 : vector<256xf32> to vector<1x256xf32>
    %cst_18 = arith.constant 8.000000e+00 : f32
    %44 = vector.broadcast %cst_18 : f32 to vector<1x256xf32>
    %45 = arith.divf %43, %44 : vector<1x256xf32>
    %46 = arith.mulf %40, %40 : vector<1x256xf32>
    %47 = arith.subf %45, %46 : vector<1x256xf32>
    %c0_19 = arith.constant 0 : index
    %c0_20 = arith.constant 0 : index
    %48 = vector.load %arg4[%c0_19, %c0_20] : memref<2x256xf32, #tpu.memory_space<vmem>>, vector<1x256xf32>
    %cst_21 = arith.constant 9.99999974E-6 : f32
    %49 = vector.broadcast %cst_21 : f32 to vector<1x256xf32>
    %50 = arith.addf %47, %49 : vector<1x256xf32>
    %51 = math.rsqrt %50 : vector<1x256xf32>
    %52 = arith.mulf %48, %51 : vector<1x256xf32>
    %c1_22 = arith.constant 1 : index
    %c0_23 = arith.constant 0 : index
    %53 = vector.load %arg4[%c1_22, %c0_23] : memref<2x256xf32, #tpu.memory_space<vmem>>, vector<1x256xf32>
    %54 = arith.mulf %40, %52 : vector<1x256xf32>
    %55 = arith.subf %53, %54 : vector<1x256xf32>
    %56 = vector.broadcast %52 : vector<1x256xf32> to vector<8x256xf32>
    %57 = arith.mulf %35, %56 : vector<8x256xf32>
    %58 = vector.broadcast %55 : vector<1x256xf32> to vector<8x256xf32>
    %59 = arith.addf %57, %58 : vector<8x256xf32>
    %cst_24 = arith.constant 0.000000e+00 : f32
    %60 = vector.broadcast %cst_24 : f32 to vector<8x256xf32>
    %61 = arith.maximumf %59, %60 : vector<8x256xf32>
    %62 = arith.addf %36, %61 : vector<8x256xf32>
    %c0_25 = arith.constant 0 : index
    %c0_26 = arith.constant 0 : index
    %63 = vector.load %arg5[%c0_25, %c0_26] : memref<256x256xbf16, #tpu.memory_space<vmem>>, vector<256x256xbf16>
    %64 = arith.extf %63 : vector<256x256xbf16> to vector<256x256xf32>
    %cst_27 = arith.constant dense<0.000000e+00> : vector<8x256xf32>
    %65 = tpu.matmul %62, %64, %cst_27 {dimension_numbers = #tpu.dot_dimension_numbers<[1], [0], [0], [1], [0, 0, 1, 1], [], []>} : vector<8x256xf32>, vector<256x256xf32>, vector<8x256xf32> -> vector<8x256xf32>
    %66 = vector.extract_strided_slice %65 {offsets = [0, 0], sizes = [8, 128], strides = [1, 1]} : vector<8x256xf32> to vector<8x128xf32>
    %67 = vector.extract_strided_slice %65 {offsets = [0, 128], sizes = [8, 128], strides = [1, 1]} : vector<8x256xf32> to vector<8x128xf32>
    %cst_28 = arith.constant dense<0.000000e+00> : vector<128xf32>
    %68 = vector.multi_reduction <add>, %66, %cst_28 [0] : vector<8x128xf32> to vector<128xf32>
    %69 = vector.shape_cast %68 : vector<128xf32> to vector<1x128xf32>
    %cst_29 = arith.constant 8.000000e+00 : f32
    %70 = vector.broadcast %cst_29 : f32 to vector<1x128xf32>
    %71 = arith.divf %69, %70 : vector<1x128xf32>
    %72 = arith.mulf %66, %66 : vector<8x128xf32>
    %cst_30 = arith.constant dense<0.000000e+00> : vector<128xf32>
    %73 = vector.multi_reduction <add>, %72, %cst_30 [0] : vector<8x128xf32> to vector<128xf32>
    %74 = vector.shape_cast %73 : vector<128xf32> to vector<1x128xf32>
    %cst_31 = arith.constant 8.000000e+00 : f32
    %75 = vector.broadcast %cst_31 : f32 to vector<1x128xf32>
    %76 = arith.divf %74, %75 : vector<1x128xf32>
    %77 = arith.mulf %71, %71 : vector<1x128xf32>
    %78 = arith.subf %76, %77 : vector<1x128xf32>
    %c0_32 = arith.constant 0 : index
    %c0_33 = arith.constant 0 : index
    %79 = vector.load %arg6[%c0_32, %c0_33] : memref<2x128xf32, #tpu.memory_space<vmem>>, vector<1x128xf32>
    %cst_34 = arith.constant 9.99999974E-6 : f32
    %80 = vector.broadcast %cst_34 : f32 to vector<1x128xf32>
    %81 = arith.addf %78, %80 : vector<1x128xf32>
    %82 = math.rsqrt %81 : vector<1x128xf32>
    %83 = arith.mulf %79, %82 : vector<1x128xf32>
    %c1_35 = arith.constant 1 : index
    %c0_36 = arith.constant 0 : index
    %84 = vector.load %arg6[%c1_35, %c0_36] : memref<2x128xf32, #tpu.memory_space<vmem>>, vector<1x128xf32>
    %85 = arith.mulf %71, %83 : vector<1x128xf32>
    %86 = arith.subf %84, %85 : vector<1x128xf32>
    %87 = vector.broadcast %83 : vector<1x128xf32> to vector<8x128xf32>
    %88 = arith.mulf %66, %87 : vector<8x128xf32>
    %89 = vector.broadcast %86 : vector<1x128xf32> to vector<8x128xf32>
    %90 = arith.addf %88, %89 : vector<8x128xf32>
    %cst_37 = arith.constant 0.000000e+00 : f32
    %91 = vector.broadcast %cst_37 : f32 to vector<8x128xf32>
    %92 = arith.maximumf %90, %91 : vector<8x128xf32>
    %93 = arith.addf %67, %92 : vector<8x128xf32>
    %c0_38 = arith.constant 0 : index
    %c0_39 = arith.constant 0 : index
    %94 = vector.load %arg7[%c0_38, %c0_39] : memref<128x256xbf16, #tpu.memory_space<vmem>>, vector<128x256xbf16>
    %95 = arith.extf %94 : vector<128x256xbf16> to vector<128x256xf32>
    %cst_40 = arith.constant dense<0.000000e+00> : vector<8x256xf32>
    %96 = tpu.matmul %93, %95, %cst_40 {dimension_numbers = #tpu.dot_dimension_numbers<[1], [0], [0], [1], [0, 0, 1, 1], [], []>} : vector<8x128xf32>, vector<128x256xf32>, vector<8x256xf32> -> vector<8x256xf32>
    %97 = vector.extract_strided_slice %96 {offsets = [0, 0], sizes = [8, 128], strides = [1, 1]} : vector<8x256xf32> to vector<8x128xf32>
    %98 = vector.extract_strided_slice %96 {offsets = [0, 128], sizes = [8, 128], strides = [1, 1]} : vector<8x256xf32> to vector<8x128xf32>
    %cst_41 = arith.constant dense<0.000000e+00> : vector<128xf32>
    %99 = vector.multi_reduction <add>, %97, %cst_41 [0] : vector<8x128xf32> to vector<128xf32>
    %100 = vector.shape_cast %99 : vector<128xf32> to vector<1x128xf32>
    %cst_42 = arith.constant 8.000000e+00 : f32
    %101 = vector.broadcast %cst_42 : f32 to vector<1x128xf32>
    %102 = arith.divf %100, %101 : vector<1x128xf32>
    %103 = arith.mulf %97, %97 : vector<8x128xf32>
    %cst_43 = arith.constant dense<0.000000e+00> : vector<128xf32>
    %104 = vector.multi_reduction <add>, %103, %cst_43 [0] : vector<8x128xf32> to vector<128xf32>
    %105 = vector.shape_cast %104 : vector<128xf32> to vector<1x128xf32>
    %cst_44 = arith.constant 8.000000e+00 : f32
    %106 = vector.broadcast %cst_44 : f32 to vector<1x128xf32>
    %107 = arith.divf %105, %106 : vector<1x128xf32>
    %108 = arith.mulf %102, %102 : vector<1x128xf32>
    %109 = arith.subf %107, %108 : vector<1x128xf32>
    %c0_45 = arith.constant 0 : index
    %c0_46 = arith.constant 0 : index
    %110 = vector.load %arg8[%c0_45, %c0_46] : memref<2x128xf32, #tpu.memory_space<vmem>>, vector<1x128xf32>
    %cst_47 = arith.constant 9.99999974E-6 : f32
    %111 = vector.broadcast %cst_47 : f32 to vector<1x128xf32>
    %112 = arith.addf %109, %111 : vector<1x128xf32>
    %113 = math.rsqrt %112 : vector<1x128xf32>
    %114 = arith.mulf %110, %113 : vector<1x128xf32>
    %c1_48 = arith.constant 1 : index
    %c0_49 = arith.constant 0 : index
    %115 = vector.load %arg8[%c1_48, %c0_49] : memref<2x128xf32, #tpu.memory_space<vmem>>, vector<1x128xf32>
    %116 = arith.mulf %102, %114 : vector<1x128xf32>
    %117 = arith.subf %115, %116 : vector<1x128xf32>
    %118 = vector.broadcast %114 : vector<1x128xf32> to vector<8x128xf32>
    %119 = arith.mulf %97, %118 : vector<8x128xf32>
    %120 = vector.broadcast %117 : vector<1x128xf32> to vector<8x128xf32>
    %121 = arith.addf %119, %120 : vector<8x128xf32>
    %cst_50 = arith.constant 0.000000e+00 : f32
    %122 = vector.broadcast %cst_50 : f32 to vector<8x128xf32>
    %123 = arith.maximumf %121, %122 : vector<8x128xf32>
    %124 = arith.addf %98, %123 : vector<8x128xf32>
    %c0_51 = arith.constant 0 : index
    %c0_52 = arith.constant 0 : index
    %125 = vector.load %arg9[%c0_51, %c0_52] : memref<128x128xbf16, #tpu.memory_space<vmem>>, vector<128x128xbf16>
    %126 = arith.extf %125 : vector<128x128xbf16> to vector<128x128xf32>
    %cst_53 = arith.constant dense<0.000000e+00> : vector<8x128xf32>
    %127 = tpu.matmul %124, %126, %cst_53 {dimension_numbers = #tpu.dot_dimension_numbers<[1], [0], [0], [1], [0, 0, 1, 1], [], []>} : vector<8x128xf32>, vector<128x128xf32>, vector<8x128xf32> -> vector<8x128xf32>
    %c0_54 = arith.constant 0 : index
    %c0_55 = arith.constant 0 : index
    %128 = vector.load %arg10[%c0_54, %c0_55] : memref<1x128xf32, #tpu.memory_space<vmem>>, vector<1x128xf32>
    %129 = vector.broadcast %128 : vector<1x128xf32> to vector<8x128xf32>
    %130 = arith.addf %127, %129 : vector<8x128xf32>
    %c0_56 = arith.constant 0 : index
    %c0_57 = arith.constant 0 : index
    %131 = vector.load %arg11[%c0_56, %c0_57] : memref<8x128xf32, #tpu.memory_space<vmem>>, vector<8x128xf32>
    tpu.vector_store %arg11[%c0_56, %c0_57], %130 {strides = array<i32>} : memref<8x128xf32, #tpu.memory_space<vmem>>, vector<8x128xf32>,
    return
  }
}

</mosaic_0001>

<bundles_post_ra>
// kernel: tpu_custom_call.1
= control target key start
LH: loop header
LB: loop body
LE: loop exit
PB: predicated region body
PF: predicated region fallthrough
CT: control target
= control target key end

     0   :  { %16 = vsyncpa [#allocation3], 0  ;;  %s1437_s0 = inlined_call_operand.hbm [shape: f32[8,16], index: 0, kind: input, shape index: {}]   ;;  %s1438_s1 = inlined_call_operand.hbm [shape: bf16[16,256], index: 1, kind: input, shape index: {}]   ;;  %s1439_s2 = inlined_call_operand.hbm [shape: f32[2,128], index: 2, kind: input, shape index: {}]   ;;  %s1440_s3 = inlined_call_operand.hbm [shape: bf16[128,512], index: 3, kind: input, shape index: {}]   ;;  %s1441_s4 = inlined_call_operand.hbm [shape: f32[2,256], index: 4, kind: input, shape index: {}]   ;;  %s1442_s5 = inlined_call_operand.hbm [shape: bf16[256,256], index: 5, kind: input, shape index: {}]   ;;  %s1443_s6 = inlined_call_operand.vmem [shape: f32[2,128], index: 6, kind: input, shape index: {}]   ;;  %s1444_s7 = inlined_call_operand.hbm [shape: bf16[128,256], index: 7, kind: input, shape index: {}]   ;;  %s1445_s8 = inlined_call_operand.vmem [shape: f32[2,128], index: 8, kind: input, shape index: {}]   ;;  %s1446_s9 = inlined_call_operand.hbm [shape: bf16[128,128], index: 9, kind: input, shape index: {}]   ;;  %s1447_s10 = inlined_call_operand.vmem [shape: f32[1,128], index: 10, kind: input, shape index: {}]   ;;  %s1448_s11 = inlined_call_operand.hbm [shape: f32[8,128], index: 11, kind: output, shape index: {}]  }
   0x1   :  { %17 = vsyncpa [#allocation6], 0 }
   0x2   :  { %18 = vsyncpa [#allocation9], 0 }
   0x3   :  { %19 = vsyncpa [#allocation12], 0 }
   0x4   :  { %20 = vsyncpa [#allocation15], 0  ;;  %s37_s19 = sshll.u32 %s1438_s1, 4  ;;  %s38_s19 = int_to_ptr.hbm [resolvable:$true] %s37_s19 }
   0x5   :  { %21 = vsyncpa [#allocation4], 0  ;;  %s1241_s20 = smov [#allocation5]   ;;  %s61_s24 = sshll.u32 %s1440_s3, 4  ;;  %s62_s24 = int_to_ptr.hbm [resolvable:$true] %s61_s24 }
   0x6   :  { %s39_s21 = sshll.u32 %s1241_s20, 4  ;;  %s1242_s25 = smov 128   ;;  %s40_s21 = int_to_ptr.vmem [resolvable:$true] %s39_s21 }
   0x7   :  { %s1243_s26 = smov 8   ;;  %s1244_s27 = smov [#allocation8]  }
   0x8   :  { %45 = dma.hbm_to_vmem [thread:$0]  %s38_s19, 256, %s40_s21, [#allocation6], %s1242_s25, %s1242_s25, %s1243_s26  }
   0x9   :  { %s63_s28 = sshll.u32 %s1244_s27, 4  ;;  %s1245_s1 = smov 256   ;;  %s64_s28 = int_to_ptr.vmem [resolvable:$true] %s63_s28 }
   0xa   :  { %s1246_s29 = smov 16   ;;  %s85_s13 = sshll.u32 %s1442_s5, 4  ;;  %s86_s13 = int_to_ptr.hbm [resolvable:$true] %s85_s13 }
   0xb   :  { %69 = dma.hbm_to_vmem [thread:$0]  %s62_s24, 4096, %s64_s28, [#allocation9], %s1245_s1, %s1245_s1, %s1246_s29  }
   0xc   :  { %s1247_s14 = smov [#allocation11]   ;;  %s27_s17 = sshll.u32 %s1437_s0, 4  ;;  %s28_s17 = int_to_ptr.hbm [resolvable:$true] %s27_s17 }
   0xd   :  { %s87_s3 = sshll.u32 %s1247_s14, 4  ;;  %s1248_s18 = smov [#allocation2]   ;;  %s88_s3 = int_to_ptr.vmem [resolvable:$true] %s87_s3 }
   0xe   :  { %93 = dma.hbm_to_vmem [thread:$0]  %s86_s13, 4096, %s88_s3, [#allocation12], %s1242_s25, %s1242_s25, %s1243_s26  }
   0xf   :  { %s29_s19 = sshll.u32 %s1248_s18, 4  ;;  %s51_s22 = sshll.u32 %s1439_s2, 4  ;;  %s30_s19 = int_to_ptr.vmem [resolvable:$true] %s29_s19  ;;  %s52_s22 = int_to_ptr.hbm [resolvable:$true] %s51_s22 }
  0x10   :  { %32 = dma.hbm_to_vmem [thread:$0]  %s28_s17, 128, %s30_s19, [#allocation3]  }
  0x11   :  { %s75_s24 = sshll.u32 %s1441_s4, 4  ;;  %s1249_s27 = smov [#allocation7]   ;;  %s76_s24 = int_to_ptr.hbm [resolvable:$true] %s75_s24 }
  0x12   :  { %s53_s0 = sshll.u32 %s1249_s27, 4  ;;  %s1250_s28 = smov [#allocation10]   ;;  %s54_s0 = int_to_ptr.vmem [resolvable:$true] %s53_s0 }
  0x13   :  { %56 = dma.hbm_to_vmem [thread:$0]  %s52_s22, 32, %s54_s0, [#allocation6]  }
  0x14   :  { %s77_s1 = sshll.u32 %s1250_s28, 4  ;;  %s100_s12 = sshll.u32 %s1444_s7, 4  ;;  %s78_s1 = int_to_ptr.vmem [resolvable:$true] %s77_s1  ;;  %s101_s12 = int_to_ptr.hbm [resolvable:$true] %s100_s12 }
  0x15   :  { %80 = dma.hbm_to_vmem [thread:$0]  %s76_s24, 64, %s78_s1, [#allocation9]  }
  0x16   :  { %s115_s14 = sshll.u32 %s1446_s9, 4  ;;  %s1251_s3 = smov [#allocation13]   ;;  %s116_s14 = int_to_ptr.hbm [resolvable:$true] %s115_s14 }
  0x17   :  { %s102_s4 = sshll.u32 %s1251_s3, 4  ;;  %s1252_s15 = smov [#allocation14]   ;;  %s103_s4 = int_to_ptr.vmem [resolvable:$true] %s102_s4 }
  0x18   :  { %108 = dma.hbm_to_vmem [thread:$0]  %s101_s12, 2048, %s103_s4, [#allocation12], %s1242_s25, %s1242_s25, %s1243_s26  }
  0x19   :  { %s117_s16 = sshll.u32 %s1252_s15, 4  ;;  %s1253_s17 = smov 64   ;;  %s118_s16 = int_to_ptr.vmem [resolvable:$true] %s117_s16 }
  0x1a   :  { %s1254_s7 = smov 4  }
  0x1b   :  { %123 = dma.hbm_to_vmem [thread:$0]  %s116_s14, 1024, %s118_s16, [#allocation15], %s1253_s17, %s1253_s17, %s1254_s7  }
  0x1c   :  { %1229 = dma.done.wait [#allocation3], 128  }
  0x1d   :  { %1230 = vsyncadd [#allocation3], 4294967168 }
  0x1e   :  { %1231 = dma.done.wait [#allocation6], 288  }
  0x1f   :  { %1232 = vsyncadd [#allocation6], 4294967008 }
  0x20   :  { %1233 = dma.done.wait [#allocation9], 4160  }
  0x21   :  { %1234 = vsyncadd [#allocation9], 4294963136 }
  0x22   :  { %1235 = dma.done.wait [#allocation12], 6144  }
  0x23   :  { %1236 = vsyncadd [#allocation12], 4294961152 }
  0x24   :  { %1237 = dma.done.wait [#allocation15], 1024  }
  0x25   :  { %1238 = vsyncadd [#allocation15], 4294966272  ;;  %v160_v0 = vld [vmem:[#allocation5 + $0x8] sm:$0xff]  ;;  %v159_v1 = vld [vmem:[#allocation5] sm:$0xff]  ;;  %vm165_vm0 = vcmask 130048   ;;  %v1255_v7 = vmov 8.0  }
  0x26   :  { %v163_v2 = vunpack.c.l.bf16 %v160_v0  ;;  %v161_v3 = vunpack.c.l.bf16 %v159_v1  ;;  %v158_v4 = vld [vmem:[#allocation2] sm:$0xff]  ;;  %v164_v5 = vunpack.c.h.bf16 %v160_v0  ;;  %v162_v6 = vunpack.c.h.bf16 %v159_v1  ;;  %v285_v8 = vld [vmem:[#allocation8 + $0xf0] sm:$0xff]  ;;  %v286_v9 = vld [vmem:[#allocation8 + $0xf8] sm:$0xff]  ;;  %s1256_s23 = smov [#allocation16]  }
  0x27   :  { %1001 = vrcp.f32 %v1255_v7  ;;  %v283_v10 = vld [vmem:[#allocation8 + $0xe0] sm:$0xff]  ;;  %v347_v11 = vunpack.c.l.bf16 %v285_v8  ;;  %v348_v12 = vunpack.c.h.bf16 %v285_v8  ;;  %v349_v13 = vunpack.c.l.bf16 %v286_v9  ;;  %v284_v15 = vld [vmem:[#allocation8 + $0xe8] sm:$0xff]  ;;  %v281_v16 = vld [vmem:[#allocation8 + $0xd0] sm:$0xff]  ;;  %s927_s24 = sshll.u32 %s1256_s23, 4  ;;  %s928_s24 = int_to_ptr.vmem [resolvable:$true] %s927_s24 }
  0x28   :  { %183 = vmatpush.msra.mxu1 %v163_v2  ;;  %v350_v14 = vunpack.c.h.bf16 %v286_v9  ;;  %v282_v17 = vld [vmem:[#allocation8 + $0xd8] sm:$0xff]  ;;  %v343_v18 = vunpack.c.l.bf16 %v283_v10  ;;  %v344_v19 = vunpack.c.h.bf16 %v283_v10  ;;  %v345_v20 = vunpack.c.l.bf16 %v284_v15  ;;  %v279_v22 = vld [vmem:[#allocation8 + $0xc0] sm:$0xff]  ;;  %v280_v25 = vld [vmem:[#allocation8 + $0xc8] sm:$0xff] }
  0x29   :  { %v346_v21 = vunpack.c.h.bf16 %v284_v15  ;;  %351 = vmatpush.msra.mxu2 %v347_v11  ;;  %371 = vmatpush.msra.mxu3 %v348_v12  ;;  %v339_v23 = vunpack.c.l.bf16 %v281_v16  ;;  %v340_v24 = vunpack.c.h.bf16 %v281_v16  ;;  %v341_v26 = vunpack.c.l.bf16 %v282_v17  ;;  %v277_v28 = vld [vmem:[#allocation8 + $0xb0] sm:$0xff]  ;;  %v278_v31 = vld [vmem:[#allocation8 + $0xb8] sm:$0xff]  ;;  %v275_v35 = vld [vmem:[#allocation8 + $0xa0] sm:$0xff] }
  0x2a   :  { %184 = vmatpush.msra.mxu1 %v161_v3  ;;  %391 = vmatpush.msra.mxu0 %v349_v13  ;;  %v342_v27 = vunpack.c.h.bf16 %v282_v17  ;;  %v335_v29 = vunpack.c.l.bf16 %v279_v22  ;;  %v336_v30 = vunpack.c.h.bf16 %v279_v22  ;;  %v337_v33 = vunpack.c.l.bf16 %v280_v25  ;;  %v276_v38 = vld [vmem:[#allocation8 + $0xa8] sm:$0xff]  ;;  %v273_v41 = vld [vmem:[#allocation8 + $0x90] sm:$0xff]  ;;  %v274_v44 = vld [vmem:[#allocation8 + $0x98] sm:$0xff] }
  0x2b   :  { %943 = vmatmul.msk.f32.vlgmr.msra.gmra.mxu1 %vm165_vm0, %v158_v4  ;;  %352 = vmatpush.msra.mxu2 %v343_v18  ;;  %v338_v34 = vunpack.c.h.bf16 %v280_v25  ;;  %v331_v36 = vunpack.c.l.bf16 %v277_v28  ;;  %v332_v37 = vunpack.c.h.bf16 %v277_v28  ;;  %v333_v39 = vunpack.c.l.bf16 %v278_v31  ;;  %v271_v47 = vld [vmem:[#allocation8 + $0x80] sm:$0xff]  ;;  %v272_v51 = vld [vmem:[#allocation8 + $0x88] sm:$0xff]  ;;  %v269_v54 = vld [vmem:[#allocation8 + $0x70] sm:$0xff] }
  0x2c   :  { %203 = vmatpush.msrb.mxu1 %v164_v5  ;;  %372 = vmatpush.msra.mxu3 %v344_v19  ;;  %v334_v40 = vunpack.c.h.bf16 %v278_v31  ;;  %v327_v42 = vunpack.c.l.bf16 %v275_v35  ;;  %v328_v43 = vunpack.c.h.bf16 %v275_v35  ;;  %v329_v45 = vunpack.c.l.bf16 %v276_v38  ;;  %v270_v57 = vld [vmem:[#allocation8 + $0x78] sm:$0xff]  ;;  %v267_v60 = vld [vmem:[#allocation8 + $0x60] sm:$0xff]  ;;  %v268_v0 = vld [vmem:[#allocation8 + $0x68] sm:$0xff] }
  0x2d   :  { %v1350_v32 = vpop.eup %1001  ;;  %392 = vmatpush.msra.mxu0 %v345_v20  ;;  %353 = vmatpush.msra.mxu2 %v339_v23  ;;  %v330_v46 = vunpack.c.h.bf16 %v276_v38  ;;  %v323_v49 = vunpack.c.l.bf16 %v273_v41  ;;  %v324_v50 = vunpack.c.h.bf16 %v273_v41  ;;  %v325_v52 = vunpack.c.l.bf16 %v274_v44  ;;  %v265_v3 = vld [vmem:[#allocation8 + $0x50] sm:$0xff]  ;;  %v266_v7 = vld [vmem:[#allocation8 + $0x58] sm:$0xff]  ;;  %v263_v12 = vld [vmem:[#allocation8 + $0x40] sm:$0xff] }
  0x2e   :  { %204 = vmatpush.msrb.mxu1 %v162_v6  ;;  %373 = vmatpush.msra.mxu3 %v340_v24  ;;  %v216_v48 = vmul.f32 8.0, %v1350_v32  ;;  %v326_v53 = vunpack.c.h.bf16 %v274_v44  ;;  %v319_v55 = vunpack.c.l.bf16 %v271_v47  ;;  %v320_v56 = vunpack.c.h.bf16 %v271_v47  ;;  %v264_v16 = vld [vmem:[#allocation8 + $0x48] sm:$0xff]  ;;  %v262_v24 = vld [vmem:[#allocation8 + $0x38] sm:$0xff] }
  0x2f   :  { %393 = vmatpush.msra.mxu0 %v341_v26  ;;  %354 = vmatpush.msra.mxu2 %v335_v29  ;;  %v321_v58 = vunpack.c.l.bf16 %v272_v51  ;;  %v322_v59 = vunpack.c.h.bf16 %v272_v51  ;;  %v315_v62 = vunpack.c.l.bf16 %v269_v54  ;;  %v316_v63 = vunpack.c.h.bf16 %v269_v54  ;;  %v259_v29 = vld [vmem:[#allocation8 + $0x20] sm:$0xff] }
  0x30   :  { %411 = vmatpush.msra.mxu1 %v350_v14  ;;  %374 = vmatpush.msra.mxu3 %v336_v30  ;;  %v217_v61 = vsub.f32 1.0, %v216_v48  ;;  %v317_v1 = vunpack.c.l.bf16 %v270_v57  ;;  %v318_v2 = vunpack.c.h.bf16 %v270_v57  ;;  %v311_v5 = vunpack.c.l.bf16 %v267_v60 }
  0x31   :  { %394 = vmatpush.msra.mxu0 %v337_v33  ;;  %355 = vmatpush.msra.mxu2 %v331_v36  ;;  %v312_v6 = vunpack.c.h.bf16 %v267_v60  ;;  %v313_v10 = vunpack.c.l.bf16 %v268_v0  ;;  %v314_v11 = vunpack.c.h.bf16 %v268_v0  ;;  %v307_v14 = vunpack.c.l.bf16 %v265_v3 }
  0x32   :  { %412 = vmatpush.msra.mxu1 %v346_v21  ;;  %375 = vmatpush.msra.mxu3 %v332_v37  ;;  %v218_v13 = vmul.f32 %v1350_v32, %v217_v61  ;;  %v308_v15 = vunpack.c.h.bf16 %v265_v3  ;;  %v309_v19 = vunpack.c.l.bf16 %v266_v7  ;;  %v310_v20 = vunpack.c.h.bf16 %v266_v7  ;;  %v261_v21 = vld [vmem:[#allocation8 + $0x30] sm:$0xff]  ;;  %v233_v7 = vld [vmem:[#allocation7] sm:$0x1] }
  0x33   :  { %944 = vmatmul.msk.f32.vlgmr.msrb.gmra.mxu1 %vm165_vm0, %v158_v4  ;;  %395 = vmatpush.msra.mxu0 %v333_v39  ;;  %v303_v22 = vunpack.c.l.bf16 %v263_v12  ;;  %v304_v23 = vunpack.c.h.bf16 %v263_v12  ;;  %v306_v28 = vunpack.c.h.bf16 %v264_v16  ;;  %vm220_vm1 = vweird.f32 %v1350_v32 }
  0x34   :  { %413 = vmatpush.msra.mxu1 %v342_v27  ;;  %356 = vmatpush.msra.mxu2 %v327_v42  ;;  %v305_v27 = vunpack.c.l.bf16 %v264_v16  ;;  %v219_v30 = vadd.f32 %v1350_v32, %v218_v13  ;;  %v299_v31 = vunpack.c.l.bf16 %v261_v21  ;;  %v300_v33 = vunpack.c.h.bf16 %v261_v21  ;;  %v538_v21 = vld [vmem:[#allocation11 + $0x78] sm:$0xff] }
  0x35   :  { %376 = vmatpush.msra.mxu3 %v328_v43  ;;  %396 = vmatpush.msra.mxu0 %v329_v45  ;;  %v301_v37 = vunpack.c.l.bf16 %v262_v24  ;;  %v302_v38 = vunpack.c.h.bf16 %v262_v24  ;;  %v295_v39 = vunpack.c.l.bf16 %v259_v29  ;;  %vm491_vm10 = vcmask 1040384  }
  0x36   :  { %414 = vmatpush.msra.mxu1 %v338_v34  ;;  %357 = vmatpush.msra.mxu2 %v323_v49  ;;  %v260_v34 = vld [vmem:[#allocation8 + $0x28] sm:$0xff]  ;;  %v1365_v45 = vsel %vm220_vm1, %v1350_v32, %v219_v30 }
  0x37   :  { %377 = vmatpush.msra.mxu3 %v324_v50  ;;  %397 = vmatpush.msra.mxu0 %v325_v52  ;;  %v297_v43 = vunpack.c.l.bf16 %v260_v34  ;;  %v298_v44 = vunpack.c.h.bf16 %v260_v34  ;;  %v257_v52 = vld [vmem:[#allocation8 + $0x10] sm:$0xff] }
  0x38   :  { %415 = vmatpush.msra.mxu1 %v334_v40  ;;  %358 = vmatpush.msra.mxu2 %v319_v55  ;;  %v296_v40 = vunpack.c.h.bf16 %v259_v29  ;;  %v291_v32 = vunpack.c.l.bf16 %v257_v52  ;;  %v292_v54 = vunpack.c.h.bf16 %v257_v52 }
  0x39   :  { %378 = vmatpush.msra.mxu3 %v320_v56  ;;  %398 = vmatpush.msra.mxu0 %v321_v58  ;;  %v255_v58 = vld [vmem:[#allocation8] sm:$0xff] }
  0x3a   :  { %416 = vmatpush.msra.mxu1 %v330_v46  ;;  %359 = vmatpush.msra.mxu2 %v315_v62  ;;  %v287_v60 = vunpack.c.l.bf16 %v255_v58  ;;  %v288_v61 = vunpack.c.h.bf16 %v255_v58 }
  0x3b   :  { %379 = vmatpush.msra.mxu3 %v316_v63  ;;  %399 = vmatpush.msra.mxu0 %v317_v1 }
  0x3c   :  { %417 = vmatpush.msra.mxu1 %v326_v53  ;;  %360 = vmatpush.msra.mxu2 %v311_v5  ;;  %v258_v53 = vld [vmem:[#allocation8 + $0x18] sm:$0xff] }
  0x3d   :  { %380 = vmatpush.msra.mxu3 %v312_v6  ;;  %400 = vmatpush.msra.mxu0 %v313_v10  ;;  %v293_v55 = vunpack.c.l.bf16 %v258_v53  ;;  %v294_v56 = vunpack.c.h.bf16 %v258_v53 }
  0x3e   :  { %418 = vmatpush.msra.mxu1 %v322_v59  ;;  %361 = vmatpush.msra.mxu2 %v307_v14  ;;  %v256_v59 = vld [vmem:[#allocation8 + $0x8] sm:$0xff] }
  0x3f   :  { %381 = vmatpush.msra.mxu3 %v308_v15  ;;  %401 = vmatpush.msra.mxu0 %v309_v19  ;;  %v289_v62 = vunpack.c.l.bf16 %v256_v59  ;;  %v290_v63 = vunpack.c.h.bf16 %v256_v59 }
  0x40   :  { %419 = vmatpush.msra.mxu1 %v318_v2  ;;  %362 = vmatpush.msra.mxu2 %v303_v22  ;;  %v554_v22 = vld [vmem:[#allocation11 + $0xf8] sm:$0xff] }
  0x41   :  { %382 = vmatpush.msra.mxu3 %v304_v23  ;;  %402 = vmatpush.msra.mxu0 %v305_v27  ;;  %v585_v23 = vunpack.c.l.bf16 %v538_v21  ;;  %v617_v24 = vunpack.c.l.bf16 %v554_v22  ;;  %v537_v27 = vld [vmem:[#allocation11 + $0x70] sm:$0xff] }
  0x42   :  { %420 = vmatpush.msra.mxu1 %v314_v11  ;;  %363 = vmatpush.msra.mxu2 %v299_v31  ;;  %v246_v11 = vld [vmem:[#allocation7 + $0x1] sm:$0x1]  ;;  %v584_v31 = vunpack.c.h.bf16 %v537_v27 }
  0x43   :  { %383 = vmatpush.msra.mxu3 %v300_v33  ;;  %403 = vmatpush.msra.mxu0 %v301_v37 }
  0x44   :  { %421 = vmatpush.msra.mxu1 %v310_v20  ;;  %364 = vmatpush.msra.mxu2 %v295_v39 }
  0x45   :  { %384 = vmatpush.msra.mxu3 %v296_v40  ;;  %404 = vmatpush.msra.mxu0 %v297_v43 }
  0x46   :  { %422 = vmatpush.msra.mxu1 %v306_v28  ;;  %365 = vmatpush.msra.mxu2 %v291_v32  ;;  %v553_v28 = vld [vmem:[#allocation11 + $0xf0] sm:$0xff] }
  0x47   :  { %385 = vmatpush.msra.mxu3 %v292_v54  ;;  %405 = vmatpush.msra.mxu0 %v293_v55  ;;  %v615_v29 = vunpack.c.l.bf16 %v553_v28  ;;  %v616_v30 = vunpack.c.h.bf16 %v553_v28  ;;  %v534_v55 = vld [vmem:[#allocation11 + $0x58] sm:$0xff] }
  0x48   :  { %423 = vmatpush.msra.mxu1 %v302_v38  ;;  %366 = vmatpush.msra.mxu2 %v287_v60 }
  0x49   :  { %386 = vmatpush.msra.mxu3 %v288_v61  ;;  %406 = vmatpush.msra.mxu0 %v289_v62  ;;  %v577_v61 = vunpack.c.l.bf16 %v534_v55 }
  0x4a   :  { %424 = vmatpush.msra.mxu1 %v298_v44  ;;  %619 = vmatpush.msrb.mxu2 %v585_v23 }
  0x4b   :  { %639 = vmatpush.msrb.mxu3 %v617_v24 }
  0x4c   :  { %425 = vmatpush.msra.mxu1 %v294_v56  ;;  %v550_v56 = vld [vmem:[#allocation11 + $0xd8] sm:$0xff] }
  0x4d   :  { %640 = vmatpush.msrb.mxu3 %v615_v29  ;;  %v609_v62 = vunpack.c.l.bf16 %v550_v56 }
  0x4e   :  { %426 = vmatpush.msra.mxu1 %v290_v63  ;;  %v610_v63 = vunpack.c.h.bf16 %v550_v56 }
  0xa8   :  { %v1353_v4 = vpop.f32.mrf.mxu1 }
  0xa9   :  { %v209_v8 = vrot.slane %v1353_v4, 4  ;;  %v223_v9 = vmul.f32 %v1353_v4, %v1353_v4 }
  0xab   :  { %v210_v17 = vadd.f32 %v209_v8, %v1353_v4  ;;  %v224_v18 = vrot.slane %v223_v9, 4 }
  0xad   :  { %v211_v25 = vrot.slane %v210_v17, 2  ;;  %v225_v26 = vadd.f32 %v224_v18, %v223_v9 }
  0xaf   :  { %v212_v35 = vadd.f32 %v211_v25, %v210_v17  ;;  %v226_v36 = vrot.slane %v225_v26, 2  ;;  %v618_v25 = vunpack.c.h.bf16 %v554_v22  ;;  %v547_v22 = vld [vmem:[#allocation11 + $0xc0] sm:$0xff] }
  0xb0   :  { %v206_v18 = vpop.f32.mrf.mxu1  ;;  %v604_v29 = vunpack.c.h.bf16 %v547_v22 }
  0xb1   :  { %v213_v41 = vrot.slane %v212_v35, 1  ;;  %v227_v42 = vadd.f32 %v226_v36, %v225_v26  ;;  %v586_v26 = vunpack.c.h.bf16 %v538_v21  ;;  %679 = vmatpush.msrb.mxu1 %v618_v25  ;;  %v552_v36 = vld [vmem:[#allocation11 + $0xe8] sm:$0xff]  ;;  %v531_v21 = vld [vmem:[#allocation11 + $0x40] sm:$0xff] }
  0xb2   :  { %v614_v43 = vunpack.c.h.bf16 %v552_v36  ;;  %v571_v28 = vunpack.c.l.bf16 %v531_v21 }
  0xb3   :  { %v214_v46 = vadd.f32 %v213_v41, %v212_v35  ;;  %v228_v47 = vrot.slane %v227_v42, 1  ;;  %659 = vmatpush.msrb.mxu0 %v586_v26  ;;  %v536_v35 = vld [vmem:[#allocation11 + $0x68] sm:$0xff]  ;;  %680 = vmatpush.msrb.mxu1 %v616_v30  ;;  %v530_v30 = vld [vmem:[#allocation11 + $0x38] sm:$0xff] }
  0xb4   :  { %v581_v41 = vunpack.c.l.bf16 %v536_v35  ;;  %v582_v44 = vunpack.c.h.bf16 %v536_v35 }
  0xb5   :  { %v229_v48 = vadd.f32 %v228_v47, %v227_v42  ;;  %v222_v49 = vmul.f32 %v1365_v45, %v214_v46  ;;  %660 = vmatpush.msrb.mxu0 %v584_v31  ;;  %v613_v42 = vunpack.c.l.bf16 %v552_v36  ;;  %v535_v46 = vld [vmem:[#allocation11 + $0x60] sm:$0xff]  ;;  %681 = vmatpush.msrb.mxu1 %v614_v43  ;;  %v546_v31 = vld [vmem:[#allocation11 + $0xb8] sm:$0xff]  ;;  %v529_v43 = vld [vmem:[#allocation11 + $0x30] sm:$0xff] }
  0xb6   :  { %v551_v47 = vld [vmem:[#allocation11 + $0xe0] sm:$0xff]  ;;  %v579_v52 = vunpack.c.l.bf16 %v535_v46  ;;  %v580_v54 = vunpack.c.h.bf16 %v535_v46 }
  0xb7   :  { %v230_v50 = vmul.f32 %v229_v48, %v1365_v45  ;;  %v231_v51 = vmul.f32 %v222_v49, %v222_v49  ;;  %641 = vmatpush.msrb.mxu3 %v613_v42  ;;  %v611_v53 = vunpack.c.l.bf16 %v551_v47  ;;  %v612_v32 = vunpack.c.h.bf16 %v551_v47  ;;  %661 = vmatpush.msrb.mxu0 %v582_v44  ;;  %v545_v44 = vld [vmem:[#allocation11 + $0xb0] sm:$0xff] }
  0xb8   :  { %v602_v42 = vunpack.c.h.bf16 %v546_v31 }
  0xb9   :  { %v232_v57 = vsub.f32 %v230_v50, %v231_v51  ;;  %642 = vmatpush.msrb.mxu3 %v611_v53  ;;  %662 = vmatpush.msrb.mxu0 %v580_v54  ;;  %v600_v53 = vunpack.c.h.bf16 %v545_v44  ;;  %v544_v54 = vld [vmem:[#allocation11 + $0xa8] sm:$0xff] }
  0xba   :  { %682 = vmatpush.msrb.mxu1 %v612_v32  ;;  %v528_v32 = vld [vmem:[#allocation11 + $0x28] sm:$0xff] }
  0xbb   :  { %v234_v0 = vadd.f32 1e-05, %v232_v57  ;;  %643 = vmatpush.msrb.mxu3 %v609_v62  ;;  %v566_v62 = vunpack.c.h.bf16 %v528_v32 }
  0xbc   :  { %683 = vmatpush.msrb.mxu1 %v610_v63  ;;  %v526_v63 = vld [vmem:[#allocation11 + $0x18] sm:$0xff] }
  0xbd   :  { %1003 = vrsqrt.f32 %v234_v0  ;;  %vm241_vm3 = vweird.f32 %v234_v0 }
  0xc3   :  { %v1004_v1 = vpop.eup %1003 }
  0xc4   :  { %v236_v2 = vmul.f32 %v1004_v1, %v234_v0  ;;  %vm242_vm2 = vweird.f32 %v1004_v1  ;;  %v578_v0 = vunpack.c.h.bf16 %v534_v55 }
  0xc5   :  { %vm243_vm4 = vmor %vm241_vm3, %vm242_vm2 }
  0xc6   :  { %v237_v3 = vmul.f32 %v1004_v1, %v236_v2  ;;  %v549_v2 = vld [vmem:[#allocation11 + $0xd0] sm:$0xff]  ;;  %663 = vmatpush.msrb.mxu0 %v578_v0 }
  0xc8   :  { %v238_v5 = vmul.f32 0.5, %v237_v3 }
  0xca   :  { %v239_v6 = vsub.f32 1.5, %v238_v5 }
  0xcc   :  { %v240_v8 = vmul.f32 %v1004_v1, %v239_v6 }
  0xce   :  { %v244_v9 = vsel %vm243_vm4, %v1004_v1, %v240_v8  ;;  %v533_v1 = vld [vmem:[#allocation11 + $0x50] sm:$0xff] }
  0xcf   :  { %v245_v10 = vmul.f32 %v244_v9, %v233_v7  ;;  %v575_v8 = vunpack.c.l.bf16 %v533_v1  ;;  %v607_v9 = vunpack.c.l.bf16 %v549_v2 }
  0xd1   :  { %v247_v12 = vmul.f32 %v245_v10, %v222_v49  ;;  %v249_v13 = vperm.slane %v245_v10, 0  ;;  %v608_v10 = vunpack.c.h.bf16 %v549_v2  ;;  %644 = vmatpush.msrb.mxu3 %v607_v9  ;;  %v598_v2 = vunpack.c.h.bf16 %v544_v54 }
  0xd3   :  { %v248_v14 = vsub.f32 %v246_v11, %v247_v12  ;;  %v250_v15 = vmul.f32 %v249_v13, %v1353_v4  ;;  %v583_v4 = vunpack.c.l.bf16 %v537_v27  ;;  %v532_v11 = vld [vmem:[#allocation11 + $0x48] sm:$0xff]  ;;  %684 = vmatpush.msrb.mxu1 %v608_v10  ;;  %v561_v10 = vunpack.c.l.bf16 %v526_v63 }
  0xd4   :  { %v548_v12 = vld [vmem:[#allocation11 + $0xc8] sm:$0xff]  ;;  %v574_v27 = vunpack.c.h.bf16 %v532_v11 }
  0xd5   :  { %v251_v16 = vperm.slane %v248_v14, 0  ;;  %620 = vmatpush.msrb.mxu2 %v583_v4  ;;  %v603_v4 = vunpack.c.l.bf16 %v547_v22 }
  0xd7   :  { %v252_v17 = vadd.f32 %v251_v16, %v250_v15  ;;  %621 = vmatpush.msrb.mxu2 %v581_v41  ;;  %v601_v41 = vunpack.c.l.bf16 %v546_v31 }
  0xd9   :  { %v253_v19 = vmax.f32 %v252_v17, 0.0  ;;  %622 = vmatpush.msrb.mxu2 %v579_v52  ;;  %v576_v17 = vunpack.c.h.bf16 %v533_v1  ;;  %v599_v52 = vunpack.c.l.bf16 %v545_v44 }
  0xdb   :  { %v254_v20 = vadd.f32 %v253_v19, %v206_v18  ;;  %623 = vmatpush.msrb.mxu2 %v577_v61  ;;  %v573_v18 = vunpack.c.l.bf16 %v532_v11  ;;  %v605_v19 = vunpack.c.l.bf16 %v548_v12  ;;  %664 = vmatpush.msrb.mxu0 %v576_v17  ;;  %v597_v61 = vunpack.c.l.bf16 %v544_v54  ;;  %v541_v11 = vld [vmem:[#allocation11 + $0x90] sm:$0xff]  ;;  %v540_v17 = vld [vmem:[#allocation11 + $0x88] sm:$0xff] }
  0xdd   :  { %367 = vmatmul.f32.vlgmr.msra.gmra.mxu2 %v254_v20  ;;  %387 = vmatmul.f32.vlgmr.msra.gmra.mxu3 %v254_v20 }
  0xde   :  { %407 = vmatmul.f32.vlgmr.msra.gmra.mxu0 %v254_v20  ;;  %427 = vmatmul.f32.vlgmr.msra.gmra.mxu1 %v254_v20  ;;  %v606_v20 = vunpack.c.h.bf16 %v548_v12 }
  0xdf   :  { %624 = vmatpush.msrb.mxu2 %v575_v8  ;;  %645 = vmatpush.msrb.mxu3 %v605_v19  ;;  %v525_v8 = vld [vmem:[#allocation11 + $0x10] sm:$0xff] }
  0xe0   :  { %665 = vmatpush.msrb.mxu0 %v574_v27  ;;  %685 = vmatpush.msrb.mxu1 %v606_v20  ;;  %v560_v19 = vunpack.c.h.bf16 %v525_v8  ;;  %v523_v20 = vld [vmem:[#allocation11] sm:$0xff]  ;;  %v590_v27 = vunpack.c.h.bf16 %v540_v17 }
  0xe1   :  { %625 = vmatpush.msrb.mxu2 %v573_v18  ;;  %646 = vmatpush.msrb.mxu3 %v603_v4  ;;  %v591_v18 = vunpack.c.l.bf16 %v541_v11  ;;  %v556_v31 = vunpack.c.h.bf16 %v523_v20 }
  0xe2   :  { %686 = vmatpush.msrb.mxu1 %v604_v29 }
  0xe3   :  { %626 = vmatpush.msrb.mxu2 %v571_v28  ;;  %647 = vmatpush.msrb.mxu3 %v601_v41  ;;  %v555_v28 = vunpack.c.l.bf16 %v523_v20 }
  0xe4   :  { %687 = vmatpush.msrb.mxu1 %v602_v42 }
  0xe5   :  { %648 = vmatpush.msrb.mxu3 %v599_v52 }
  0xe6   :  { %688 = vmatpush.msrb.mxu1 %v600_v53 }
  0xe7   :  { %649 = vmatpush.msrb.mxu3 %v597_v61 }
  0xe8   :  { %689 = vmatpush.msrb.mxu1 %v598_v2 }
 0x160   :  { %v1370_v33 = vpop.f32.mrf.mxu2  ;;  %v1372_v34 = vpop.f32.mrf.mxu3 }
 0x161   :  { %v431_v37 = vrot.slane %v1370_v33, 4  ;;  %v445_v38 = vmul.f32 %v1370_v33, %v1370_v33  ;;  %v437_v39 = vrot.slane %v1372_v34, 4  ;;  %v446_v40 = vmul.f32 %v1372_v34, %v1372_v34 }
 0x163   :  { %v432_v48 = vadd.f32 %v431_v37, %v1370_v33  ;;  %v447_v49 = vrot.slane %v445_v38, 4  ;;  %v438_v50 = vadd.f32 %v437_v39, %v1372_v34  ;;  %v453_v51 = vrot.slane %v446_v40, 4 }
 0x164   :  { %v572_v39 = vunpack.c.h.bf16 %v531_v21  ;;  %v592_v21 = vunpack.c.h.bf16 %v541_v11 }
 0x165   :  { %v433_v57 = vrot.slane %v432_v48, 2  ;;  %v448_v58 = vadd.f32 %v447_v49, %v445_v38  ;;  %v439_v59 = vrot.slane %v438_v50, 2  ;;  %v454_v60 = vadd.f32 %v453_v51, %v446_v40 }
 0x166   :  { %v569_v40 = vunpack.c.l.bf16 %v530_v30  ;;  %666 = vmatpush.msrb.mxu0 %v572_v39  ;;  %v567_v51 = vunpack.c.l.bf16 %v529_v43 }
 0x167   :  { %v434_v3 = vadd.f32 %v433_v57, %v432_v48  ;;  %v449_v5 = vrot.slane %v448_v58, 2  ;;  %v440_v6 = vadd.f32 %v439_v59, %v438_v50  ;;  %v455_v7 = vrot.slane %v454_v60, 2  ;;  %v527_v59 = vld [vmem:[#allocation11 + $0x20] sm:$0xff] }
 0x168   :  { %v570_v50 = vunpack.c.h.bf16 %v530_v30  ;;  %627 = vmatpush.msrb.mxu2 %v569_v40  ;;  %v568_v57 = vunpack.c.h.bf16 %v529_v43 }
 0x169   :  { %v435_v13 = vrot.slane %v434_v3, 1  ;;  %v450_v14 = vadd.f32 %v449_v5, %v448_v58  ;;  %v441_v15 = vrot.slane %v440_v6, 1  ;;  %v456_v16 = vadd.f32 %v455_v7, %v454_v60  ;;  %v543_v60 = vld [vmem:[#allocation11 + $0xa0] sm:$0xff]  ;;  %v542_v5 = vld [vmem:[#allocation11 + $0x98] sm:$0xff] }
 0x16a   :  { %v565_v58 = vunpack.c.l.bf16 %v528_v32  ;;  %667 = vmatpush.msrb.mxu0 %v570_v50  ;;  %628 = vmatpush.msrb.mxu2 %v567_v51  ;;  %v564_v7 = vunpack.c.h.bf16 %v527_v59  ;;  %v596_v9 = vunpack.c.h.bf16 %v543_v60  ;;  %v593_v12 = vunpack.c.l.bf16 %v542_v5 }
 0x16b   :  { %v436_v23 = vadd.f32 %v435_v13, %v434_v3  ;;  %v451_v24 = vrot.slane %v450_v14, 1  ;;  %v442_v25 = vadd.f32 %v441_v15, %v440_v6  ;;  %v457_v26 = vrot.slane %v456_v16, 1 }
 0x16c   :  { %v563_v3 = vunpack.c.l.bf16 %v527_v59  ;;  %668 = vmatpush.msrb.mxu0 %v568_v57  ;;  %v595_v6 = vunpack.c.l.bf16 %v543_v60  ;;  %629 = vmatpush.msrb.mxu2 %v565_v58  ;;  %v562_v13 = vunpack.c.h.bf16 %v526_v63  ;;  %v594_v15 = vunpack.c.h.bf16 %v542_v5  ;;  %v496_v57 = vld [vmem:[#allocation10 + $0x1] ss:$2 sm:$0x3] }
 0x16d   :  { %v1383_v35 = vmul.f32 %v436_v23, %v1365_v45  ;;  %v452_v36 = vadd.f32 %v451_v24, %v450_v14  ;;  %v1386_v37 = vmul.f32 %v442_v25, %v1365_v45  ;;  %v458_v38 = vadd.f32 %v457_v26, %v456_v16  ;;  %v524_v14 = vld [vmem:[#allocation11 + $0x8] sm:$0xff]  ;;  %690 = vmatpush.msrb.mxu1 %v596_v9  ;;  %v539_v23 = vld [vmem:[#allocation11 + $0x80] sm:$0xff] }
 0x16e   :  { %669 = vmatpush.msrb.mxu0 %v566_v62  ;;  %630 = vmatpush.msrb.mxu2 %v563_v3  ;;  %v559_v16 = vunpack.c.l.bf16 %v525_v8  ;;  %v557_v22 = vunpack.c.l.bf16 %v524_v14  ;;  %v589_v24 = vunpack.c.l.bf16 %v540_v17  ;;  %v558_v25 = vunpack.c.h.bf16 %v524_v14 }
 0x16f   :  { %v459_v46 = vmul.f32 %v452_v36, %v1365_v45  ;;  %v461_v47 = vmul.f32 %v1383_v35, %v1383_v35  ;;  %v460_v48 = vmul.f32 %v458_v38, %v1365_v45  ;;  %v462_v49 = vmul.f32 %v1386_v37, %v1386_v37  ;;  %650 = vmatpush.msrb.mxu3 %v595_v6  ;;  %v408_v6 = vpop.f32.mrf.mxu0 }
 0x170   :  { %670 = vmatpush.msrb.mxu0 %v564_v7  ;;  %631 = vmatpush.msrb.mxu2 %v561_v10  ;;  %v587_v30 = vunpack.c.l.bf16 %v539_v23  ;;  %v588_v38 = vunpack.c.h.bf16 %v539_v23  ;;  %v428_v7 = vpop.f32.mrf.mxu1  ;;  %v748_v23 = vld [vmem:[#allocation13 + $0x50] sm:$0xff] }
 0x171   :  { %v463_v55 = vsub.f32 %v459_v46, %v461_v47  ;;  %v464_v56 = vsub.f32 %v460_v48, %v462_v49  ;;  %651 = vmatpush.msrb.mxu3 %v593_v12  ;;  %691 = vmatpush.msrb.mxu1 %v594_v15  ;;  %v465_v49 = vld [vmem:[#allocation10] ss:$2 sm:$0x3]  ;;  %v751_v12 = vld [vmem:[#allocation13 + $0x68] sm:$0xff]  ;;  %v750_v15 = vld [vmem:[#allocation13 + $0x60] sm:$0xff] }
 0x172   :  { %671 = vmatpush.msrb.mxu0 %v562_v13  ;;  %632 = vmatpush.msrb.mxu2 %v559_v16  ;;  %v780_v13 = vunpack.c.l.bf16 %v751_v12  ;;  %v781_v14 = vunpack.c.h.bf16 %v751_v12  ;;  %v778_v16 = vunpack.c.l.bf16 %v750_v15  ;;  %v779_v17 = vunpack.c.h.bf16 %v750_v15 }
 0x173   :  { %v1394_v0 = vadd.f32 1e-05, %v463_v55  ;;  %v1396_v1 = vadd.f32 1e-05, %v464_v56  ;;  %652 = vmatpush.msrb.mxu3 %v591_v18  ;;  %692 = vmatpush.msrb.mxu1 %v592_v21  ;;  %v749_v18 = vld [vmem:[#allocation13 + $0x58] sm:$0xff] }
 0x174   :  { %672 = vmatpush.msrb.mxu0 %v560_v19  ;;  %633 = vmatpush.msrb.mxu2 %v557_v22  ;;  %v776_v19 = vunpack.c.l.bf16 %v749_v18  ;;  %v777_v20 = vunpack.c.h.bf16 %v749_v18 }
 0x175   :  { %1005 = vrsqrt.f32 %v1394_v0  ;;  %653 = vmatpush.msrb.mxu3 %v589_v24  ;;  %693 = vmatpush.msrb.mxu1 %v590_v27  ;;  %vm484_vm7 = vweird.f32 %v1396_v1  ;;  %vm474_vm9 = vweird.f32 %v1394_v0  ;;  %v747_v27 = vld [vmem:[#allocation13 + $0x48] sm:$0xff] }
 0x176   :  { %1007 = vrsqrt.f32 %v1396_v1  ;;  %673 = vmatpush.msrb.mxu0 %v558_v25  ;;  %634 = vmatpush.msrb.mxu2 %v555_v28  ;;  %v774_v25 = vunpack.c.l.bf16 %v748_v23 }
 0x177   :  { %654 = vmatpush.msrb.mxu3 %v587_v30  ;;  %694 = vmatpush.msrb.mxu1 %v588_v38  ;;  %v773_v30 = vunpack.c.h.bf16 %v747_v27 }
 0x178   :  { %674 = vmatpush.msrb.mxu0 %v556_v31  ;;  %v746_v31 = vld [vmem:[#allocation13 + $0x40] sm:$0xff] }
 0x17b   :  { %v1006_v26 = vpop.eup %1005 }
 0x17c   :  { %v1008_v4 = vpop.eup %1007  ;;  %v469_v29 = vmul.f32 %v1006_v26, %v1394_v0  ;;  %vm475_vm6 = vweird.f32 %v1006_v26 }
 0x17d   :  { %v479_v36 = vmul.f32 %v1008_v4, %v1396_v1  ;;  %vm485_vm5 = vweird.f32 %v1008_v4  ;;  %vm476_vm11 = vmor %vm474_vm9, %vm475_vm6 }
 0x17e   :  { %v470_v39 = vmul.f32 %v1006_v26, %v469_v29  ;;  %vm486_vm8 = vmor %vm484_vm7, %vm485_vm5  ;;  %v772_v29 = vunpack.c.l.bf16 %v747_v27 }
 0x17f   :  { %v480_v40 = vmul.f32 %v1008_v4, %v479_v36 }
 0x180   :  { %v471_v41 = vmul.f32 0.5, %v470_v39  ;;  %v770_v39 = vunpack.c.l.bf16 %v746_v31 }
 0x181   :  { %v481_v42 = vmul.f32 0.5, %v480_v40  ;;  %v771_v40 = vunpack.c.h.bf16 %v746_v31 }
 0x182   :  { %v472_v43 = vsub.f32 1.5, %v471_v41  ;;  %v745_v41 = vld [vmem:[#allocation13 + $0x38] sm:$0xff] }
 0x183   :  { %v482_v44 = vsub.f32 1.5, %v481_v42 }
 0x184   :  { %v473_v46 = vmul.f32 %v1006_v26, %v472_v43 }
 0x185   :  { %v483_v47 = vmul.f32 %v1008_v4, %v482_v44  ;;  %v768_v44 = vunpack.c.l.bf16 %v745_v41 }
 0x186   :  { %v477_v51 = vsel %vm476_vm11, %v1006_v26, %v473_v46  ;;  %v775_v26 = vunpack.c.h.bf16 %v748_v23  ;;  %v769_v46 = vunpack.c.h.bf16 %v745_v41  ;;  %v982_v41 = vld [vmem:[#allocation14 + $0x30] sm:$0xff]  }
 0x187   :  { %v487_v48 = vsel %vm486_vm8, %v1008_v4, %v483_v47  ;;  %v744_v47 = vld [vmem:[#allocation13 + $0x30] sm:$0xff] }
 0x188   :  { %v490_v50 = vrot.slane %v487_v48, 7 }
 0x18a   :  { %v492_v52 = vsel %vm491_vm10, %v477_v51, %v490_v50  ;;  %v766_v50 = vunpack.c.l.bf16 %v744_v47  ;;  %v767_v51 = vunpack.c.h.bf16 %v744_v47 }
 0x18b   :  { %v494_v53 = vmul.f32 %v492_v52, %v465_v49  ;;  %v743_v52 = vld [vmem:[#allocation13 + $0x28] sm:$0xff] }
 0x18d   :  { %v499_v32 = vperm.slane %v494_v53, 1  ;;  %v498_v54 = vperm.slane %v494_v53, 0 }
 0x18f   :  { %v503_v55 = vmul.f32 %v499_v32, %v1386_v37  ;;  %v502_v58 = vmul.f32 %v498_v54, %v1383_v35  ;;  %v511_v61 = vmul.f32 %v499_v32, %v1372_v34  ;;  %v510_v62 = vmul.f32 %v498_v54, %v1370_v33  ;;  %v753_v35 = vld [vmem:[#allocation13 + $0x78] sm:$0xff]  ;;  %v752_v34 = vld [vmem:[#allocation13 + $0x70] sm:$0xff] }
 0x190   :  { %v784_v9 = vunpack.c.l.bf16 %v753_v35  ;;  %v785_v10 = vunpack.c.h.bf16 %v753_v35  ;;  %v782_v33 = vunpack.c.l.bf16 %v752_v34  ;;  %v783_v11 = vunpack.c.h.bf16 %v752_v34 }
 0x191   :  { %v506_v56 = vrot.slane %v503_v55, 7  ;;  %v764_v54 = vunpack.c.l.bf16 %v743_v52  ;;  %v765_v55 = vunpack.c.h.bf16 %v743_v52 }
 0x192   :  { %786 = vmatpush.msra.mxu2 %v784_v9  ;;  %806 = vmatpush.msra.mxu3 %v785_v10 }
 0x193   :  { %v507_v59 = vsel %vm491_vm10, %v502_v58, %v506_v56  ;;  %v742_v56 = vld [vmem:[#allocation13 + $0x20] sm:$0xff] }
 0x194   :  { %v509_v60 = vsub.f32 %v496_v57, %v507_v59  ;;  %787 = vmatpush.msra.mxu2 %v782_v33  ;;  %807 = vmatpush.msra.mxu3 %v783_v11  ;;  %v762_v59 = vunpack.c.l.bf16 %v742_v56 }
 0x196   :  { %v513_v63 = vperm.slane %v509_v60, 0  ;;  %v514_v0 = vperm.slane %v509_v60, 1  ;;  %788 = vmatpush.msra.mxu2 %v780_v13  ;;  %808 = vmatpush.msra.mxu3 %v781_v14  ;;  %v763_v60 = vunpack.c.h.bf16 %v742_v56 }
 0x198   :  { %v517_v1 = vadd.f32 %v513_v63, %v510_v62  ;;  %v518_v2 = vadd.f32 %v514_v0, %v511_v61  ;;  %789 = vmatpush.msra.mxu2 %v778_v16  ;;  %809 = vmatpush.msra.mxu3 %v779_v17  ;;  %v741_v61 = vld [vmem:[#allocation13 + $0x18] sm:$0xff]  ;;  %v740_v62 = vld [vmem:[#allocation13 + $0x10] sm:$0xff]  ;;  %v716_v17 = vld [vmem:[%s1443_s6] sm:$0x1] }
 0x199   :  { %v760_v63 = vunpack.c.l.bf16 %v741_v61  ;;  %v761_v0 = vunpack.c.h.bf16 %v741_v61  ;;  %v978_v61 = vld [vmem:[#allocation14 + $0x10] sm:$0xff]  }
 0x19a   :  { %v519_v3 = vmax.f32 %v517_v1, 0.0  ;;  %v520_v5 = vmax.f32 %v518_v2, 0.0  ;;  %790 = vmatpush.msra.mxu2 %v776_v19  ;;  %810 = vmatpush.msra.mxu3 %v777_v20  ;;  %v739_v1 = vld [vmem:[#allocation13 + $0x8] sm:$0xff] }
 0x19b   :  { %v756_v35 = vunpack.c.l.bf16 %v739_v1  ;;  %v757_v9 = vunpack.c.h.bf16 %v739_v1 }
 0x19c   :  { %v521_v8 = vadd.f32 %v519_v3, %v408_v6  ;;  %v522_v37 = vadd.f32 %v520_v5, %v428_v7  ;;  %791 = vmatpush.msra.mxu2 %v774_v25  ;;  %811 = vmatpush.msra.mxu3 %v775_v26  ;;  %v758_v5 = vunpack.c.l.bf16 %v740_v62  ;;  %v759_v6 = vunpack.c.h.bf16 %v740_v62  ;;  %v738_v7 = vld [vmem:[#allocation13] sm:$0xff] }
 0x19d   :  { %v754_v34 = vunpack.c.l.bf16 %v738_v7  ;;  %v755_v33 = vunpack.c.h.bf16 %v738_v7 }
 0x19e   :  { %635 = vmatmul.f32.vlgmr.msrb.gmra.mxu2 %v521_v8  ;;  %655 = vmatmul.f32.vlgmr.msrb.gmra.mxu3 %v522_v37 }
 0x19f   :  { %675 = vmatmul.f32.vlgmr.msrb.gmra.mxu0 %v521_v8  ;;  %695 = vmatmul.f32.vlgmr.msrb.gmra.mxu1 %v522_v37 }
 0x1a0   :  { %792 = vmatpush.msra.mxu2 %v772_v29  ;;  %812 = vmatpush.msra.mxu3 %v773_v30 }
 0x1a2   :  { %793 = vmatpush.msra.mxu2 %v770_v39  ;;  %813 = vmatpush.msra.mxu3 %v771_v40 }
 0x1a4   :  { %794 = vmatpush.msra.mxu2 %v768_v44  ;;  %814 = vmatpush.msra.mxu3 %v769_v46  ;;  %v981_v44 = vld [vmem:[#allocation14 + $0x28] sm:$0xff]  }
 0x1a5   :  { %v967_v46 = vunpack.c.l.bf16 %v981_v44 }
 0x1a6   :  { %795 = vmatpush.msra.mxu2 %v766_v50  ;;  %815 = vmatpush.msra.mxu3 %v767_v51 }
 0x1a8   :  { %796 = vmatpush.msra.mxu2 %v764_v54  ;;  %816 = vmatpush.msra.mxu3 %v765_v55  ;;  %v979_v54 = vld [vmem:[#allocation14 + $0x18] sm:$0xff]  }
 0x1aa   :  { %797 = vmatpush.msra.mxu2 %v762_v59  ;;  %817 = vmatpush.msra.mxu3 %v763_v60  ;;  %v959_v60 = vunpack.c.l.bf16 %v979_v54 }
 0x1ac   :  { %798 = vmatpush.msra.mxu2 %v760_v63  ;;  %818 = vmatpush.msra.mxu3 %v761_v0  ;;  %v956_v0 = vunpack.c.h.bf16 %v978_v61 }
 0x1ae   :  { %799 = vmatpush.msra.mxu2 %v758_v5  ;;  %819 = vmatpush.msra.mxu3 %v759_v6  ;;  %v977_v5 = vld [vmem:[#allocation14 + $0x8] sm:$0xff]  }
 0x1b0   :  { %800 = vmatpush.msra.mxu2 %v756_v35  ;;  %820 = vmatpush.msra.mxu3 %v757_v9  ;;  %v951_v9 = vunpack.c.l.bf16 %v977_v5 }
 0x1b2   :  { %801 = vmatpush.msra.mxu2 %v754_v34  ;;  %821 = vmatpush.msra.mxu3 %v755_v33 }
 0x221   :  { %v636_v21 = vpop.f32.mrf.mxu2  ;;  %v656_v22 = vpop.f32.mrf.mxu3 }
 0x222   :  { %v1408_v24 = vadd.f32 %v656_v22, %v636_v21  ;;  %v729_v21 = vld [vmem:[%s1443_s6 + $0x1] sm:$0x1] }
 0x224   :  { %v699_v28 = vrot.slane %v1408_v24, 4  ;;  %v706_v4 = vmul.f32 %v1408_v24, %v1408_v24 }
 0x226   :  { %v700_v36 = vadd.f32 %v699_v28, %v1408_v24  ;;  %v707_v38 = vrot.slane %v706_v4, 4  ;;  %v676_v28 = vpop.f32.mrf.mxu0 }
 0x228   :  { %v701_v42 = vrot.slane %v700_v36, 2  ;;  %v708_v43 = vadd.f32 %v707_v38, %v706_v4  ;;  %v696_v4 = vpop.f32.mrf.mxu1  ;;  %v983_v38 = vld [vmem:[#allocation14 + $0x38] sm:$0xff]  }
 0x229   :  { %v697_v30 = vadd.f32 %v696_v4, %v676_v28  ;;  %v976_v39 = vunpack.c.h.bf16 %v983_v38  ;;  %v975_v40 = vunpack.c.l.bf16 %v983_v38 }
 0x22a   :  { %v702_v48 = vadd.f32 %v701_v42, %v700_v36  ;;  %v709_v49 = vrot.slane %v708_v43, 2  ;;  %v972_v42 = vunpack.c.h.bf16 %v982_v41 }
 0x22b   :  { %901 = vmatpush.msra.mxu0 %v976_v39 }
 0x22c   :  { %v703_v53 = vrot.slane %v702_v48, 1  ;;  %v710_v32 = vadd.f32 %v709_v49, %v708_v43  ;;  %v971_v43 = vunpack.c.l.bf16 %v982_v41 }
 0x22d   :  { %902 = vmatpush.msra.mxu0 %v975_v40 }
 0x22e   :  { %v704_v57 = vadd.f32 %v703_v53, %v702_v48  ;;  %v711_v58 = vrot.slane %v710_v32, 1  ;;  %v980_v48 = vld [vmem:[#allocation14 + $0x20] sm:$0xff]  }
 0x22f   :  { %903 = vmatpush.msra.mxu0 %v972_v42  ;;  %v964_v51 = vunpack.c.h.bf16 %v980_v48 }
 0x230   :  { %v705_v2 = vmul.f32 %v704_v57, %v1365_v45  ;;  %v712_v3 = vadd.f32 %v711_v58, %v710_v32  ;;  %v963_v32 = vunpack.c.l.bf16 %v980_v48  ;;  %v960_v57 = vunpack.c.h.bf16 %v979_v54 }
 0x231   :  { %904 = vmatpush.msra.mxu0 %v971_v43 }
 0x232   :  { %v713_v8 = vmul.f32 %v712_v3, %v1365_v45  ;;  %v714_v37 = vmul.f32 %v705_v2, %v705_v2  ;;  %v955_v3 = vunpack.c.l.bf16 %v978_v61 }
 0x234   :  { %v715_v10 = vsub.f32 %v713_v8, %v714_v37  ;;  %v952_v8 = vunpack.c.h.bf16 %v977_v5 }
 0x236   :  { %v717_v11 = vadd.f32 1e-05, %v715_v10  ;;  %v946_v10 = vld [vmem:[#allocation14] sm:$0xff]  }
 0x237   :  { %v948_v33 = vunpack.c.h.bf16 %v946_v10 }
 0x238   :  { %1009 = vrsqrt.f32 %v717_v11  ;;  %vm724_vm13 = vweird.f32 %v717_v11 }
 0x23e   :  { %v1010_v12 = vpop.eup %1009 }
 0x23f   :  { %v719_v13 = vmul.f32 %v1010_v12, %v717_v11  ;;  %vm725_vm12 = vweird.f32 %v1010_v12 }
 0x240   :  { %vm726_vm14 = vmor %vm724_vm13, %vm725_vm12 }
 0x241   :  { %v720_v14 = vmul.f32 %v1010_v12, %v719_v13 }
 0x243   :  { %v721_v15 = vmul.f32 0.5, %v720_v14 }
 0x245   :  { %v722_v16 = vsub.f32 1.5, %v721_v15 }
 0x247   :  { %v723_v18 = vmul.f32 %v1010_v12, %v722_v16 }
 0x249   :  { %v727_v19 = vsel %vm726_vm14, %v1010_v12, %v723_v18  ;;  %v947_v12 = vunpack.c.l.bf16 %v946_v10 }
 0x24a   :  { %v728_v20 = vmul.f32 %v727_v19, %v716_v17 }
 0x24c   :  { %v732_v22 = vperm.slane %v728_v20, 0  ;;  %v730_v23 = vmul.f32 %v728_v20, %v705_v2 }
 0x24e   :  { %v731_v25 = vsub.f32 %v729_v21, %v730_v23  ;;  %v733_v26 = vmul.f32 %v732_v22, %v1408_v24  ;;  %v968_v24 = vunpack.c.h.bf16 %v981_v44  ;;  %v856_v21 = vld [vmem:[%s1445_s8 + $0x1] sm:$0x1] }
 0x250   :  { %v734_v27 = vperm.slane %v731_v25, 0  ;;  %905 = vmatpush.msra.mxu0 %v968_v24 }
 0x252   :  { %v735_v29 = vadd.f32 %v734_v27, %v733_v26  ;;  %906 = vmatpush.msra.mxu0 %v967_v46 }
 0x254   :  { %v736_v31 = vmax.f32 %v735_v29, 0.0  ;;  %907 = vmatpush.msra.mxu0 %v964_v51 }
 0x256   :  { %v737_v36 = vadd.f32 %v736_v31, %v697_v30  ;;  %908 = vmatpush.msra.mxu0 %v963_v32  ;;  %v1000_v31 = vld [vmem:[%s1447_s10] ss:$0 sm:$0xff] }
 0x258   :  { %802 = vmatmul.f32.vlgmr.msra.gmra.mxu2 %v737_v36  ;;  %822 = vmatmul.f32.vlgmr.msra.gmra.mxu3 %v737_v36 }
 0x259   :  { %909 = vmatpush.msra.mxu0 %v960_v57 }
 0x25b   :  { %910 = vmatpush.msra.mxu0 %v959_v60 }
 0x25d   :  { %911 = vmatpush.msra.mxu0 %v956_v0 }
 0x25f   :  { %912 = vmatpush.msra.mxu0 %v955_v3 }
 0x261   :  { %913 = vmatpush.msra.mxu0 %v952_v8 }
 0x263   :  { %914 = vmatpush.msra.mxu0 %v951_v9 }
 0x265   :  { %915 = vmatpush.msra.mxu0 %v948_v33 }
 0x267   :  { %916 = vmatpush.msra.mxu0 %v947_v12 }
 0x2db   :  { %v803_v47 = vpop.f32.mrf.mxu2  ;;  %v823_v29 = vpop.f32.mrf.mxu3 }
 0x2dc   :  { %v826_v49 = vrot.slane %v803_v47, 4  ;;  %v833_v50 = vmul.f32 %v803_v47, %v803_v47 }
 0x2de   :  { %v827_v52 = vadd.f32 %v826_v49, %v803_v47  ;;  %v834_v53 = vrot.slane %v833_v50, 4 }
 0x2e0   :  { %v828_v55 = vrot.slane %v827_v52, 2  ;;  %v835_v56 = vadd.f32 %v834_v53, %v833_v50 }
 0x2e2   :  { %v829_v58 = vadd.f32 %v828_v55, %v827_v52  ;;  %v836_v59 = vrot.slane %v835_v56, 2 }
 0x2e4   :  { %v830_v62 = vrot.slane %v829_v58, 1  ;;  %v837_v63 = vadd.f32 %v836_v59, %v835_v56 }
 0x2e6   :  { %v831_v1 = vadd.f32 %v830_v62, %v829_v58  ;;  %v838_v2 = vrot.slane %v837_v63, 1 }
 0x2e8   :  { %v832_v6 = vmul.f32 %v831_v1, %v1365_v45  ;;  %v839_v7 = vadd.f32 %v838_v2, %v837_v63 }
 0x2ea   :  { %v840_v37 = vmul.f32 %v839_v7, %v1365_v45  ;;  %v841_v35 = vmul.f32 %v832_v6, %v832_v6  ;;  %v843_v45 = vld [vmem:[%s1445_s8] sm:$0x1]  ;;  %s929_s8 = sshll.u32 %s1448_s11, 4  ;;  %s930_s8 = int_to_ptr.hbm [resolvable:$true] %s929_s8 }
 0x2ec   :  { %v842_v34 = vsub.f32 %v840_v37, %v841_v35 }
 0x2ee   :  { %v844_v11 = vadd.f32 1e-05, %v842_v34 }
 0x2f0   :  { %1011 = vrsqrt.f32 %v844_v11  ;;  %vm851_vm0 = vweird.f32 %v844_v11 }
 0x2f6   :  { %v1012_v13 = vpop.eup %1011 }
 0x2f7   :  { %v846_v14 = vmul.f32 %v1012_v13, %v844_v11  ;;  %vm852_vm15 = vweird.f32 %v1012_v13 }
 0x2f8   :  { %vm853_vm1 = vmor %vm851_vm0, %vm852_vm15 }
 0x2f9   :  { %v847_v15 = vmul.f32 %v1012_v13, %v846_v14 }
 0x2fb   :  { %v848_v16 = vmul.f32 0.5, %v847_v15 }
 0x2fd   :  { %v849_v17 = vsub.f32 1.5, %v848_v16 }
 0x2ff   :  { %v850_v18 = vmul.f32 %v1012_v13, %v849_v17 }
 0x301   :  { %v854_v19 = vsel %vm853_vm1, %v1012_v13, %v850_v18 }
 0x302   :  { %v855_v20 = vmul.f32 %v854_v19, %v843_v45 }
 0x304   :  { %v859_v22 = vperm.slane %v855_v20, 0  ;;  %v857_v23 = vmul.f32 %v855_v20, %v832_v6 }
 0x306   :  { %v858_v25 = vsub.f32 %v856_v21, %v857_v23  ;;  %v860_v26 = vmul.f32 %v859_v22, %v803_v47 }
 0x308   :  { %v861_v27 = vperm.slane %v858_v25, 0 }
 0x30a   :  { %v862_v28 = vadd.f32 %v861_v27, %v860_v26 }
 0x30c   :  { %v863_v4 = vmax.f32 %v862_v28, 0.0 }
 0x30e   :  { %v864_v30 = vadd.f32 %v863_v4, %v823_v29 }
 0x310   :  { %917 = vmatmul.f32.vlgmr.msra.gmra.mxu0 %v864_v30 }
 0x38d   :  { %v918_v36 = vpop.f32.mrf.mxu0 }
 0x38e   :  { %v919_v38 = vadd.f32 %v1000_v31, %v918_v36 }
 0x390   :  { %921 = vst [vmem:[#allocation16] sm:$0xff] %v919_v38 }
 0x391   :  { %932 = dma.vmem_to_hbm [thread:$0]  %s928_s24, 128, %s930_s8, [#allocation4]  }
 0x392   :  { %1239 = dma.done.wait [#allocation4], 128  }
 0x393   :  { %1240 = vsyncadd [#allocation4], 4294967168 }
 0x394   :  { %937 = vsyncpa [#allocation3], 1 }
 0x395   :  { %938 = vsyncpa [#allocation6], 1 }
 0x396   :  { %939 = vsyncpa [#allocation9], 1 }
 0x397   :  { %940 = vsyncpa [#allocation12], 1 }
 0x398   :  { %941 = vsyncpa [#allocation15], 1 }
 0x399   :  { %942 = vsyncpa [#allocation4], 1 }

</bundles_post_ra>
